<compile_context>
chip_gen: v7x
topology: tpu7x:2x2x1
jax: 0.10.0
libtpu: 0.0.40
codegen_flags: <defaults>
</compile_context>

<pallas_src>
import jax
import jax.numpy as jnp
from jax.experimental import pallas as pl
from jax.experimental.pallas import tpu as pltpu


def _mixup_ce_kernel(lam_ref, logits_ref, tgt_a_ref, tgt_b_ref, out_ref):
    """One grid step handles all T tasks for one batch tile; writes per-row mixed losses."""
    lam = lam_ref[0, 0]                                    # scalar from SMEM (read once)
    one_minus_lam = 1.0 - lam

    x = logits_ref[...].astype(jnp.float32)                # (T, bt, Cp)  f32 math
    m = jnp.max(x, axis=-1, keepdims=True)                 # (T, bt, 1)
    z = x - m
    lse = jnp.log(jnp.sum(jnp.exp(z), axis=-1, keepdims=True))   # (T, bt, 1)

    # Gather z at the integer targets via iota-compare + masked sum (no one-hot from HBM).
    cls = jax.lax.broadcasted_iota(jnp.int32, x.shape, 2)        # (T, bt, Cp)
    z_a = jnp.sum(jnp.where(cls == tgt_a_ref[...], z, 0.0), axis=-1, keepdims=True)
    z_b = jnp.sum(jnp.where(cls == tgt_b_ref[...], z, 0.0), axis=-1, keepdims=True)

    # per-row mixed CE: lam*(lse - z_a) + (1-lam)*(lse - z_b) == lse - (lam*z_a + (1-lam)*z_b)
    row = lse - (lam * z_a + one_minus_lam * z_b)          # (T, bt, 1)
    out_ref[...] = jnp.sum(row, axis=0)                    # (bt, 1) summed over tasks


def _round_up(x, m):
    return (x + m - 1) // m * m


def multitask_mixup_ce(logits, targets_a, targets_b, lam,
                       *, vmem_block_budget_bytes=4 * 1024 * 1024):
    """logits: (T, B, C) float32/bfloat16, targets_*: (T, B) int, lam: scalar. Returns scalar f32."""
    T, B, C = logits.shape
    if logits.dtype not in (jnp.bfloat16, jnp.float32):
        logits = logits.astype(jnp.float32)
    itemsize = jnp.dtype(logits.dtype).itemsize

    # Lane-dense class axis (pad with a large negative so max/lse are unaffected).
    c_pad = _round_up(C, 128)

    # Batch tile: biggest multiple of 8 whose (T, bt, c_pad) logits block fits the VMEM budget
    # (double-buffered by the pipeline; budget kept well under v7x's 64 MiB / v5e's 16 MiB default).
    bt_cap = max(8, (vmem_block_budget_bytes // (T * c_pad * itemsize)) // 8 * 8)
    bt = min(bt_cap, _round_up(B, 8))
    b_pad = _round_up(B, bt)

    neg = -1e30
    x = jnp.pad(logits, ((0, 0), (0, b_pad - B), (0, c_pad - C)), constant_values=neg)
    tgt_a = jnp.pad(targets_a.astype(jnp.int32), ((0, 0), (0, b_pad - B)))[..., None]  # (T, b_pad, 1)
    tgt_b = jnp.pad(targets_b.astype(jnp.int32), ((0, 0), (0, b_pad - B)))[..., None]
    lam_arr = jnp.full((1, 1), lam, dtype=jnp.float32)

    grid = (b_pad // bt,)
    out = pl.pallas_call(
        _mixup_ce_kernel,
        out_shape=jax.ShapeDtypeStruct((b_pad, 1), jnp.float32),
        grid_spec=pltpu.PrefetchScalarGridSpec(
            num_scalar_prefetch=0,
            grid=grid,
            in_specs=[
                pl.BlockSpec(memory_space=pltpu.SMEM),                  # lam (1,1) scalar
                pl.BlockSpec((T, bt, c_pad), lambda j: (0, j, 0)),      # logits batch tile
                pl.BlockSpec((T, bt, 1), lambda j: (0, j, 0)),          # int targets_a tile
                pl.BlockSpec((T, bt, 1), lambda j: (0, j, 0)),          # int targets_b tile
            ],
            out_specs=pl.BlockSpec((bt, 1), lambda j: (j, 0)),          # per-row partial losses
        ),
        compiler_params=pltpu.CompilerParams(
            dimension_semantics=("parallel",),   # distinct output block per step -> race-free
        ),
    )(lam_arr, x, tgt_a, tgt_b)

    # Final mean over the (unpadded) batch + sum over tasks (already summed in-kernel).
    return jnp.sum(out[:B, 0]) / jnp.float32(B)


def _reference(logits, targets_a, targets_b, lam):
    """Pure-JAX reference matching PyTorch multitask_mixup_CE."""
    logp = jax.nn.log_softmax(logits.astype(jnp.float32), axis=-1)  # (T, B, C)

    def ce(tgt):
        picked = jnp.take_along_axis(logp, tgt[..., None], axis=-1)[..., 0]  # (T, B)
        return -jnp.mean(picked, axis=-1)                                    # (T,)

    return jnp.sum(lam * ce(targets_a) + (1.0 - lam) * ce(targets_b))


if __name__ == "__main__":
    lam = 0.7
    key = jax.random.PRNGKey(0)

    # Case 1: the module's nominal shape (num_multitask=3, batch=8, classes=32), f32.
    T, B, C = 3, 8, 32
    k1, k2, k3, k4 = jax.random.split(key, 4)
    logits = jax.random.normal(k1, (T, B, C), dtype=jnp.float32)
    targets_a = jax.random.randint(k2, (T, B), 0, C, dtype=jnp.int32)
    targets_b = jax.random.randint(k3, (T, B), 0, C, dtype=jnp.int32)

    loss = jax.block_until_ready(multitask_mixup_ce(logits, targets_a, targets_b, lam))
    ref = _reference(logits, targets_a, targets_b, lam)
    assert jnp.allclose(loss, ref, rtol=1e-5, atol=1e-5), (loss, ref)

    # Case 2: bf16 logits (no wrapper upcast), ragged B / C exercising the padding paths.
    T2, B2, C2 = 3, 5, 200
    k5, k6, k7 = jax.random.split(k4, 3)
    logits2 = jax.random.normal(k5, (T2, B2, C2), dtype=jnp.float32).astype(jnp.bfloat16)
    targets_a2 = jax.random.randint(k6, (T2, B2), 0, C2, dtype=jnp.int32)
    targets_b2 = jax.random.randint(k7, (T2, B2), 0, C2, dtype=jnp.int32)

    loss2 = jax.block_until_ready(multitask_mixup_ce(logits2, targets_a2, targets_b2, lam))
    ref2 = _reference(logits2, targets_a2, targets_b2, lam)
    assert jnp.allclose(loss2, ref2, rtol=1e-4, atol=1e-4), (loss2, ref2)

    print("KERNEL_OK")
</pallas_src>

<mosaic_0001>
module attributes {stable_mosaic.version = 11 : i64} {
  func.func @_mixup_ce_kernel(%arg0: i32, %arg1: memref<1x1xf32, #tpu.memory_space<smem>>, %arg2: memref<3x8x128xf32, #tpu.memory_space<vmem>>, %arg3: memref<3x8x1xi32, #tpu.memory_space<vmem>>, %arg4: memref<3x8x1xi32, #tpu.memory_space<vmem>>, %arg5: memref<8x1xf32, #tpu.memory_space<vmem>>) attributes {dimension_semantics = [#tpu.dimension_semantics<parallel>], iteration_bounds = array<i64: 1>, scalar_prefetch = 0 : i64, scratch_operands = 0 : i64, tpu.core_type = #tpu.core_type<tc>, window_params = [{transform_indices = @transform_0, window_bounds = array<i64: 1, 1>}, {transform_indices = @transform_1, window_bounds = array<i64: 3, 8, 128>}, {transform_indices = @transform_2, window_bounds = array<i64: 3, 8, 1>}, {transform_indices = @transform_3, window_bounds = array<i64: 3, 8, 1>}, {transform_indices = @transform_4, window_bounds = array<i64: 8, 1>}]} {
    %c0 = arith.constant 0 : index
    %c0_0 = arith.constant 0 : index
    %0 = memref.load %arg1[%c0, %c0_0] : memref<1x1xf32, #tpu.memory_space<smem>>
    %cst = arith.constant 1.000000e+00 : f32
    %1 = arith.subf %cst, %0 : f32
    %c0_1 = arith.constant 0 : index
    %c0_2 = arith.constant 0 : index
    %c0_3 = arith.constant 0 : index
    %2 = vector.load %arg2[%c0_1, %c0_2, %c0_3] : memref<3x8x128xf32, #tpu.memory_space<vmem>>, vector<3x8x128xf32>
    %cst_4 = arith.constant dense<0xFF800000> : vector<3x8xf32>
    %3 = vector.multi_reduction <maximumf>, %2, %cst_4 [2] : vector<3x8x128xf32> to vector<3x8xf32>
    %4 = vector.shape_cast %3 : vector<3x8xf32> to vector<3x8x1xf32>
    %5 = vector.broadcast %4 : vector<3x8x1xf32> to vector<3x8x128xf32>
    %6 = arith.subf %2, %5 : vector<3x8x128xf32>
    %7 = math.exp %6 : vector<3x8x128xf32>
    %cst_5 = arith.constant dense<0.000000e+00> : vector<3x8xf32>
    %8 = vector.multi_reduction <add>, %7, %cst_5 [2] : vector<3x8x128xf32> to vector<3x8xf32>
    %9 = vector.shape_cast %8 : vector<3x8xf32> to vector<3x8x1xf32>
    %10 = math.log %9 : vector<3x8x1xf32>
    %11 = tpu.iota {dimensions = array<i32: 2>} : vector<3x8x128xi32>
    %c0_6 = arith.constant 0 : index
    %c0_7 = arith.constant 0 : index
    %c0_8 = arith.constant 0 : index
    %12 = vector.load %arg3[%c0_6, %c0_7, %c0_8] : memref<3x8x1xi32, #tpu.memory_space<vmem>>, vector<3x8x1xi32>
    %13 = vector.broadcast %12 : vector<3x8x1xi32> to vector<3x8x128xi32>
    %14 = arith.cmpi eq, %11, %13 : vector<3x8x128xi32>
    %cst_9 = arith.constant 0.000000e+00 : f32
    %15 = vector.broadcast %cst_9 : f32 to vector<3x8x128xf32>
    %16 = arith.select %14, %6, %15 : vector<3x8x128xi1>, vector<3x8x128xf32>
    %cst_10 = arith.constant dense<0.000000e+00> : vector<3x8xf32>
    %17 = vector.multi_reduction <add>, %16, %cst_10 [2] : vector<3x8x128xf32> to vector<3x8xf32>
    %18 = vector.shape_cast %17 : vector<3x8xf32> to vector<3x8x1xf32>
    %c0_11 = arith.constant 0 : index
    %c0_12 = arith.constant 0 : index
    %c0_13 = arith.constant 0 : index
    %19 = vector.load %arg4[%c0_11, %c0_12, %c0_13] : memref<3x8x1xi32, #tpu.memory_space<vmem>>, vector<3x8x1xi32>
    %20 = vector.broadcast %19 : vector<3x8x1xi32> to vector<3x8x128xi32>
    %21 = arith.cmpi eq, %11, %20 : vector<3x8x128xi32>
    %cst_14 = arith.constant 0.000000e+00 : f32
    %22 = vector.broadcast %cst_14 : f32 to vector<3x8x128xf32>
    %23 = arith.select %21, %6, %22 : vector<3x8x128xi1>, vector<3x8x128xf32>
    %cst_15 = arith.constant dense<0.000000e+00> : vector<3x8xf32>
    %24 = vector.multi_reduction <add>, %23, %cst_15 [2] : vector<3x8x128xf32> to vector<3x8xf32>
    %25 = vector.shape_cast %24 : vector<3x8xf32> to vector<3x8x1xf32>
    %26 = vector.broadcast %0 : f32 to vector<3x8x1xf32>
    %27 = arith.mulf %26, %18 : vector<3x8x1xf32>
    %28 = vector.broadcast %1 : f32 to vector<3x8x1xf32>
    %29 = arith.mulf %28, %25 : vector<3x8x1xf32>
    %30 = arith.addf %27, %29 : vector<3x8x1xf32>
    %31 = arith.subf %10, %30 : vector<3x8x1xf32>
    %cst_16 = arith.constant dense<0.000000e+00> : vector<8x1xf32>
    %32 = vector.multi_reduction <add>, %31, %cst_16 [0] : vector<3x8x1xf32> to vector<8x1xf32>
    %c0_17 = arith.constant 0 : index
    %c0_18 = arith.constant 0 : index
    %33 = vector.load %arg5[%c0_17, %c0_18] : memref<8x1xf32, #tpu.memory_space<vmem>>, vector<8x1xf32>
    tpu.vector_store %arg5[%c0_17, %c0_18], %32 {strides = array<i32>} : memref<8x1xf32, #tpu.memory_space<vmem>>, vector<8x1xf32>,
    return
  }
  func.func @transform_0(%arg0: i32) -> (i32, i32) {
    %c0_i32 = arith.constant 0 : i32
    %c0_i32_0 = arith.constant 0 : i32
    %c0_i32_1 = arith.constant 0 : i32
    return %c0_i32, %c0_i32_0 : i32, i32
  }
  func.func @transform_1(%arg0: i32) -> (i32, i32, i32) {
    %c0_i32 = arith.constant 0 : i32
    %c0_i32_0 = arith.constant 0 : i32
    %c0_i32_1 = arith.constant 0 : i32
    return %c0_i32, %arg0, %c0_i32_0 : i32, i32, i32
  }
  func.func @transform_2(%arg0: i32) -> (i32, i32, i32) {
    %c0_i32 = arith.constant 0 : i32
    %c0_i32_0 = arith.constant 0 : i32
    %c0_i32_1 = arith.constant 0 : i32
    return %c0_i32, %arg0, %c0_i32_0 : i32, i32, i32
  }
  func.func @transform_3(%arg0: i32) -> (i32, i32, i32) {
    %c0_i32 = arith.constant 0 : i32
    %c0_i32_0 = arith.constant 0 : i32
    %c0_i32_1 = arith.constant 0 : i32
    return %c0_i32, %arg0, %c0_i32_0 : i32, i32, i32
  }
  func.func @transform_4(%arg0: i32) -> (i32, i32) {
    %c0_i32 = arith.constant 0 : i32
    %c0_i32_0 = arith.constant 0 : i32
    return %arg0, %c0_i32 : i32, i32
  }
}

</mosaic_0001>

<bundles_post_ra>
// kernel: tpu_custom_call.1
= control target key start
LH: loop header
LB: loop body
LE: loop exit
PB: predicated region body
PF: predicated region fallthrough
CT: control target
= control target key end

     0   :  { %v137_v2 = vmov 0   ;;  %v50_v20 = vlaneseq  ;;  %vm116_vm6 = vcmask 7168   ;;  %s199_s1 = inlined_call_operand.vmem [shape: f32[3,8,128], index: 1, kind: input, shape index: {}]   ;;  %s200_s2 = inlined_call_operand.vmem [shape: s32[3,8,1], index: 2, kind: input, shape index: {}]   ;;  %s201_s3 = inlined_call_operand.vmem [shape: s32[3,8,1], index: 3, kind: input, shape index: {}]   ;;  %s202_s0 = inlined_call_operand.<no memory space> [shape: f32[1,1], index: 0, kind: input, shape index: {}]   ;;  %s203_s4 = inlined_call_operand.vmem [shape: f32[8,1], index: 4, kind: output, shape index: {}]  }
   0x1   :  { %v22_v0 = vld [vmem:[%s199_s1 + $0x10] sm:$0xff]  ;;  %v20_v1 = vld [vmem:[%s199_s1] sm:$0xff]  ;;  %123 = vset.pattern.permute.xlu1 %v137_v2  ;;  %124 = vset.pattern.permute.xlu0 %v137_v2  ;;  %v21_v3 = vld [vmem:[%s199_s1 + $0x8] sm:$0xff]  ;;  %s19_s6 = ssub.f32 1.0, %s202_s0  ;;  %v100_v44 = vstv %s202_s0 }
   0x2   :  { %27 = vmax.xlane.f32.xlu1 %v22_v0  ;;  %23 = vmax.xlane.f32.xlu0 %v20_v1  ;;  %v52_v4 = vld [vmem:[%s200_s2] sm:$0xff]  ;;  %v77_v6 = vld [vmem:[%s201_s3 + $0x8] sm:$0xff]  ;;  %v54_v8 = vld [vmem:[%s200_s2 + $0x10] sm:$0xff]  ;;  %v51_v22 = vand.u32 127, %v50_v20 }
   0x3   :  { %v76_v5 = vld [vmem:[%s201_s3] sm:$0xff]  ;;  %v53_v7 = vld [vmem:[%s200_s2 + $0x8] sm:$0xff]  ;;  %v78_v9 = vld [vmem:[%s201_s3 + $0x10] sm:$0xff]  ;;  %v104_v41 = vstv %s19_s6 }
   0x6   :  { %25 = vmax.xlane.f32.xlu0 %v21_v3 }
  0x13   :  { %56 = vperm.xlu1 %123, %v52_v4  }
  0x17   :  { %80 = vperm.xlu1 %123, %v76_v5  }
  0x1b   :  { %83 = vperm.xlu1 %123, %v77_v6  }
  0x1c   :  { %59 = vperm.xlu0 %124, %v53_v7  }
  0x1f   :  { %62 = vperm.xlu1 %123, %v54_v8  }
  0x23   :  { %86 = vperm.xlu1 %123, %v78_v9  }
  0x8f   :  { %v28_v10 = vpop.xlane.xlu1 %27  ;;  %v24_v11 = vpop.xlane.xlu0 %23 }
  0x90   :  { %v29_v12 = vsub.f32 %v20_v1, %v24_v11  ;;  %v31_v14 = vsub.f32 %v22_v0, %v28_v10 }
  0x92   :  { %v32_v13 = vmul.f32 1.442695, %v29_v12  ;;  %v36_v19 = vmul.f32 1.442695, %v31_v14 }
  0x93   :  { %v57_v15 = vpop.permute.xlu1 %56  ;;  %v26_v16 = vpop.xlane.xlu0 %25 }
  0x94   :  { %v30_v17 = vsub.f32 %v21_v3, %v26_v16  ;;  %125 = vpow2.f32 %v32_v13  ;;  %vm64_vm0 = vcmp.eq.s32.totalorder %v51_v22, %v57_v15 }
  0x95   :  { %v67_v26 = vsel %vm64_vm0, %v29_v12, 0.0 }
  0x96   :  { %v34_v18 = vmul.f32 1.442695, %v30_v17 }
  0x97   :  { %v81_v21 = vpop.permute.xlu1 %80 }
  0x98   :  { %127 = vpow2.f32 %v34_v18  ;;  %vm88_vm1 = vcmp.eq.s32.totalorder %v51_v22, %v81_v21 }
  0x99   :  { %129 = vpow2.f32 %v36_v19  ;;  %v91_v30 = vsel %vm88_vm1, %v29_v12, 0.0 }
  0x9b   :  { %v84_v23 = vpop.permute.xlu1 %83  ;;  %v60_v29 = vpop.permute.xlu0 %59 }
  0x9c   :  { %vm65_vm3 = vcmp.eq.s32.totalorder %v51_v22, %v60_v29  ;;  %vm89_vm4 = vcmp.eq.s32.totalorder %v51_v22, %v84_v23 }
  0x9d   :  { %v68_v32 = vsel %vm65_vm3, %v30_v17, 0.0  ;;  %v92_v34 = vsel %vm89_vm4, %v30_v17, 0.0 }
  0x9e   :  { %v126_v24 = vpop.eup %125 }
  0x9f   :  { %38 = vadd.xlane.f32.xlu1 %v126_v24  ;;  %v63_v27 = vpop.permute.xlu1 %62 }
  0xa0   :  { %vm66_vm2 = vcmp.eq.s32.totalorder %v51_v22, %v63_v27 }
  0xa1   :  { %v69_v31 = vsel %vm66_vm2, %v31_v14, 0.0 }
  0xa2   :  { %v128_v25 = vpop.eup %127 }
  0xa3   :  { %40 = vadd.xlane.f32.xlu0 %v128_v25  ;;  %70 = vadd.xlane.f32.xlu1 %v67_v26  ;;  %v130_v28 = vpop.eup %129  ;;  %v87_v33 = vpop.permute.xlu1 %86 }
  0xa4   :  { %vm90_vm5 = vcmp.eq.s32.totalorder %v51_v22, %v87_v33 }
  0xa5   :  { %v93_v35 = vsel %vm90_vm5, %v31_v14, 0.0 }
  0xa7   :  { %94 = vadd.xlane.f32.xlu0 %v91_v30  ;;  %42 = vadd.xlane.f32.xlu1 %v130_v28 }
  0xab   :  { %74 = vadd.xlane.f32.xlu0 %v69_v31  ;;  %72 = vadd.xlane.f32.xlu1 %v68_v32 }
  0xaf   :  { %96 = vadd.xlane.f32.xlu1 %v92_v34 }
  0xb3   :  { %98 = vadd.xlane.f32.xlu1 %v93_v35 }
 0x12c   :  { %v39_v36 = vpop.xlane.xlu1 %38 }
 0x130   :  { %v41_v37 = vpop.xlane.xlu0 %40  ;;  %v71_v38 = vpop.xlane.xlu1 %70 }
 0x131   :  { %131 = vlog2.f32 %v41_v37  ;;  %v101_v48 = vmul.f32 %v100_v44, %v71_v38 }
 0x132   :  { %133 = vlog2.f32 %v39_v36 }
 0x134   :  { %v43_v39 = vpop.xlane.xlu1 %42  ;;  %v95_v40 = vpop.xlane.xlu0 %94 }
 0x135   :  { %135 = vlog2.f32 %v43_v39  ;;  %v105_v45 = vmul.f32 %v104_v41, %v95_v40 }
 0x137   :  { %v108_v54 = vadd.f32 %v105_v45, %v101_v48 }
 0x138   :  { %v73_v42 = vpop.xlane.xlu1 %72  ;;  %v75_v52 = vpop.xlane.xlu0 %74 }
 0x139   :  { %v102_v50 = vmul.f32 %v100_v44, %v73_v42  ;;  %v103_v58 = vmul.f32 %v100_v44, %v75_v52 }
 0x13b   :  { %v132_v43 = vpop.eup %131 }
 0x13c   :  { %v134_v46 = vpop.eup %133  ;;  %v97_v47 = vpop.xlane.xlu1 %96  ;;  %v47_v49 = vmul.f32 0.6931472, %v132_v43 }
 0x13d   :  { %v106_v51 = vmul.f32 %v104_v41, %v97_v47  ;;  %v45_v53 = vmul.f32 0.6931472, %v134_v46 }
 0x13f   :  { %v109_v55 = vadd.f32 %v106_v51, %v102_v50  ;;  %v136_v56 = vpop.eup %135  ;;  %v111_v62 = vsub.f32 %v45_v53, %v108_v54 }
 0x140   :  { %v99_v57 = vpop.xlane.xlu1 %98  ;;  %v49_v61 = vmul.f32 0.6931472, %v136_v56 }
 0x141   :  { %v112_v59 = vsub.f32 %v47_v49, %v109_v55  ;;  %v107_v60 = vmul.f32 %v104_v41, %v99_v57 }
 0x143   :  { %v110_v63 = vadd.f32 %v107_v60, %v103_v58  ;;  %v114_v0 = vadd.f32 %v112_v59, %v111_v62 }
 0x145   :  { %v113_v1 = vsub.f32 %v49_v61, %v110_v63 }
 0x147   :  { %v115_v2 = vadd.f32 %v114_v0, %v113_v1 }
 0x149   :  { %117 = vst.msk [vmem:[%s203_s4] sm:$0xff] %vm116_vm6, %v115_v2 }

</bundles_post_ra>
